<compile_context>
chip_gen: v7x
topology: tpu7x:2x2x1
jax: 0.10.0
libtpu: 0.0.40
codegen_flags: <defaults>
</compile_context>

<pallas_src>
import jax
import jax.numpy as jnp
from jax import lax
from jax.experimental import pallas as pl
from jax.experimental.pallas import tpu as pltpu


def _round_up(x, m):
    return ((x + m - 1) // m) * m


# ----------------------------- Pallas kernel ---------------------------------
def rendering_kernel(x_ref, w0_ref, b0_ref, w1_ref, b1_ref, w2t_ref, b2_ref,
                     out_ref):
    # x_ref  : [tile, K_pad] bf16, pre-packed (points|view|normals|feats, 0-pad)
    # w2t_ref: [d_out, H]    bf16 (w2 transposed in the wrapper)
    # b2_ref : [d_out, 1]    f32
    # out_ref: [d_out, tile] f32  (lane-dense output block)
    x = x_ref[...]

    # Layer 0: [tile,K] @ [K,H] -> f32, bias in f32, relu on bf16 (commutes).
    h = jnp.dot(x, w0_ref[...], preferred_element_type=jnp.float32) + b0_ref[...]
    h = jnp.maximum(h.astype(w1_ref.dtype), 0)

    # Layer 1.
    h = jnp.dot(h, w1_ref[...], preferred_element_type=jnp.float32) + b1_ref[...]
    h = jnp.maximum(h.astype(w2t_ref.dtype), 0)            # [tile, H] bf16

    # Layer 2, transposed so the output is lane-dense:
    #   o_t[c, m] = sum_k w2t[c, k] * h[m, k]   -> [d_out, tile]
    o_t = lax.dot_general(
        w2t_ref[...], h,
        dimension_numbers=(((1,), (1,)), ((), ())),
        preferred_element_type=jnp.float32)
    out_ref[...] = jax.nn.sigmoid(o_t + b2_ref[...])        # squeeze_out=True


# -------------------------- wrapper-side preprocessing -------------------------
def _fold_and_pad_w0(w0, k_pad, compute_dtype):
    """Fold the -normals concat member into w0 and zero-pad K to k_pad.

    Original concat layout (mode='idr'): [pts(0:3), view(3:6), n(6:9), -n(9:12), feats(12:)].
    Packed layout used by the kernel:    [pts(0:3), view(3:6), n(6:9), feats(9:)].
    """
    w0_folded = jnp.concatenate(
        [w0[0:3], w0[3:6], w0[6:9] - w0[9:12], w0[12:]], axis=0)   # [41, H]
    k_in = w0_folded.shape[0]
    w0_p = jnp.pad(w0_folded, ((0, k_pad - k_in), (0, 0)))
    return w0_p.astype(compute_dtype), k_in


def _pack_inputs(points, view_dirs, normals, feats, k_in, k_pad, compute_dtype):
    x = jnp.concatenate([points, view_dirs, normals, feats], axis=-1)   # [N, 41]
    x = jnp.pad(x, ((0, 0), (0, k_pad - k_in)))
    return x.astype(compute_dtype)


# ------------------------------ JAX wrapper -----------------------------------
def rendering_network_forward(points, normals, view_dirs, feature_vectors, params,
                              *, tile_m=8192, k_pad=64,
                              compute_dtype=jnp.bfloat16,
                              core_parallel=False):
    """points/normals/view_dirs: [N,3]; feature_vectors: [N,d_feature]; out [N,d_out] f32."""
    N = points.shape[0]
    (w0, b0), (w1, b1), (w2, b2) = params
    d_out = w2.shape[1]

    # --- pack inputs / fold -normals into w0 / pad K (all outside the kernel) ---
    w0_p, k_in = _fold_and_pad_w0(w0, k_pad, compute_dtype)
    w1_c = w1.astype(compute_dtype)
    w2_t = w2.T.astype(compute_dtype)                        # [d_out, H]
    b0_c = b0.astype(jnp.float32)                            # [1, H]
    b1_c = b1.astype(jnp.float32)                            # [1, H]
    b2_t = b2.reshape(d_out, 1).astype(jnp.float32)          # [d_out, 1]
    x = _pack_inputs(points, view_dirs, normals, feature_vectors,
                     k_in, k_pad, compute_dtype)

    # --- tiling: big tiles (overhead amortization), grid >= 2, tile % 128 == 0
    #     (tile is the lane dim of the transposed output block) ---
    tile = min(tile_m, _round_up(pl.cdiv(N, 2), 128))
    tile = max(128, (tile // 128) * 128)
    n_pad = _round_up(N, tile)
    if n_pad != N:
        x = jnp.pad(x, ((0, n_pad - N), (0, 0)))
    grid = (n_pad // tile,)

    row_spec = pl.BlockSpec((tile, k_pad), lambda i: (i, 0))
    out_spec = pl.BlockSpec((d_out, tile), lambda i: (0, i))   # lane-dense output

    def full_spec(a):
        return pl.BlockSpec(a.shape, lambda i: (0, 0))

    # v7x: flip to CORE_PARALLEL if a profile shows one TensorCore idle.
    row_sem = pltpu.CORE_PARALLEL if core_parallel else "parallel"

    out_t = pl.pallas_call(
        rendering_kernel,
        out_shape=jax.ShapeDtypeStruct((d_out, n_pad), jnp.float32),
        grid_spec=pltpu.PrefetchScalarGridSpec(
            num_scalar_prefetch=0,
            grid=grid,
            in_specs=[
                row_spec,
                full_spec(w0_p), full_spec(b0_c),
                full_spec(w1_c), full_spec(b1_c),
                full_spec(w2_t), full_spec(b2_t),
            ],
            out_specs=out_spec,
        ),
        compiler_params=pltpu.CompilerParams(
            dimension_semantics=(row_sem,),
            # Let XLA fuse the concat+pad+cast producer into the packed-x
            # operand and skip the extra HBM round trip (hint; other operands
            # are tiny resident weights).
            allow_input_fusion=[True, False, False, False, False, False, False],
        ),
    )(x, w0_p, b0_c, w1_c, b1_c, w2_t, b2_t)

    # [d_out, n_pad] -> [N, d_out]
    return out_t[:, :N].T


# --------------------------- Parameter construction ---------------------------
def make_weight_norm_linear(key, d_in, d_out):
    """Deterministic init of a weight-normed Linear; returns effective (W^T, b).

    PyTorch weight_norm(dim=0): W_eff[i, :] = g[i] * v[i, :] / ||v[i, :]||.
    We return W_eff transposed to [d_in, d_out] for  x @ W  in the kernel.
    """
    kv, kg, kb = jax.random.split(key, 3)
    v = jax.random.normal(kv, (d_out, d_in), dtype=jnp.float32) * 0.1
    g = jax.random.uniform(kg, (d_out, 1), dtype=jnp.float32, minval=0.5, maxval=1.5)
    norm = jnp.sqrt(jnp.sum(v * v, axis=1, keepdims=True))
    w_eff = g * v / norm                               # [d_out, d_in]
    b = jax.random.normal(kb, (1, d_out), dtype=jnp.float32) * 0.01
    return w_eff.T, b                                  # ([d_in, d_out], [1, d_out])


# -------------------------- Pure-JAX reference checks --------------------------
def reference_forward_f32(points, normals, view_dirs, feats, params):
    """Exact module semantics in f32 (unfolded concat, unpadded weights)."""
    x = jnp.concatenate([points, view_dirs, normals, -1.0 * normals, feats], axis=-1)
    (w0, b0), (w1, b1), (w2, b2) = params
    x = jnp.maximum(x @ w0 + b0, 0.0)
    x = jnp.maximum(x @ w1 + b1, 0.0)
    x = x @ w2 + b2
    return jax.nn.sigmoid(x)


def reference_forward_matched(points, normals, view_dirs, feats, params,
                              *, k_pad=64, compute_dtype=jnp.bfloat16):
    """Same preprocessing/dtypes as the Pallas path (folded w0, bf16, f32 accum)."""
    (w0, b0), (w1, b1), (w2, b2) = params
    w0_p, k_in = _fold_and_pad_w0(w0, k_pad, compute_dtype)
    x = _pack_inputs(points, view_dirs, normals, feats, k_in, k_pad, compute_dtype)
    h = jnp.dot(x, w0_p, preferred_element_type=jnp.float32) + b0
    h = jnp.maximum(h.astype(compute_dtype), 0)
    h = jnp.dot(h, w1.astype(compute_dtype), preferred_element_type=jnp.float32) + b1
    h = jnp.maximum(h.astype(compute_dtype), 0)
    o = jnp.dot(h, w2.astype(compute_dtype), preferred_element_type=jnp.float32) + b2
    return jax.nn.sigmoid(o)


if __name__ == "__main__":
    # Small shapes consistent with the module hyper-params.
    d_feature = 32
    d_hidden = 64
    d_out = 3
    N = 500                  # deliberately ragged to exercise the row-padding path

    # dims[0] = d_in + d_feature with mode='idr': points(3)+view(3)+n(3)+(-n)(3)=12
    d_concat = 3 + 3 + 3 + 3 + d_feature     # 44

    key = jax.random.PRNGKey(0)
    k_pts, k_nrm, k_vw, k_ft, k_l0, k_l1, k_l2 = jax.random.split(key, 7)

    points = jax.random.normal(k_pts, (N, 3), dtype=jnp.float32)
    normals = jax.random.normal(k_nrm, (N, 3), dtype=jnp.float32)
    view_dirs = jax.random.normal(k_vw, (N, 3), dtype=jnp.float32)
    feats = jax.random.normal(k_ft, (N, d_feature), dtype=jnp.float32)

    params = (
        make_weight_norm_linear(k_l0, d_concat, d_hidden),
        make_weight_norm_linear(k_l1, d_hidden, d_hidden),
        make_weight_norm_linear(k_l2, d_hidden, d_out),
    )

    out = rendering_network_forward(points, normals, view_dirs, feats, params)
    out = jax.block_until_ready(out)
    assert out.shape == (N, d_out)

    # 1) Check against a pure-JAX path with identical preprocessing and dtypes
    #    (folded w0, bf16 inputs/weights, f32 accumulation).
    ref_matched = reference_forward_matched(points, normals, view_dirs, feats, params)
    assert jnp.allclose(out, ref_matched, atol=1e-4, rtol=1e-4), \
        "Pallas output mismatch vs dtype-matched reference"

    # 2) Semantic check against the exact f32 module math (tolerance covers the
    #    bf16 rounding of inputs/weights).
    ref_f32 = reference_forward_f32(points, normals, view_dirs, feats, params)
    assert jnp.allclose(out, ref_f32, atol=3e-2), \
        "Pallas output mismatch vs f32 module reference"

    print("KERNEL_OK")
</pallas_src>

<mosaic_0001>
module attributes {stable_mosaic.version = 11 : i64} {
  func.func @rendering_kernel(%arg0: i32, %arg1: memref<256x64xbf16, #tpu.memory_space<vmem>>, %arg2: memref<64x64xbf16, #tpu.memory_space<vmem>>, %arg3: memref<1x64xf32, #tpu.memory_space<vmem>>, %arg4: memref<64x64xbf16, #tpu.memory_space<vmem>>, %arg5: memref<1x64xf32, #tpu.memory_space<vmem>>, %arg6: memref<3x64xbf16, #tpu.memory_space<vmem>>, %arg7: memref<3x1xf32, #tpu.memory_space<vmem>>, %arg8: memref<3x256xf32, #tpu.memory_space<vmem>>) attributes {dimension_semantics = [#tpu.dimension_semantics<parallel>], iteration_bounds = array<i64: 2>, scalar_prefetch = 0 : i64, scratch_operands = 0 : i64, tpu.core_type = #tpu.core_type<tc>, window_params = [{transform_indices = @transform_0, window_bounds = array<i64: 256, 64>}, {pipeline_mode = #tpu.pipeline_mode<synchronous>, transform_indices = @transform_1, window_bounds = array<i64: 64, 64>}, {pipeline_mode = #tpu.pipeline_mode<synchronous>, transform_indices = @transform_2, window_bounds = array<i64: 1, 64>}, {pipeline_mode = #tpu.pipeline_mode<synchronous>, transform_indices = @transform_3, window_bounds = array<i64: 64, 64>}, {pipeline_mode = #tpu.pipeline_mode<synchronous>, transform_indices = @transform_4, window_bounds = array<i64: 1, 64>}, {pipeline_mode = #tpu.pipeline_mode<synchronous>, transform_indices = @transform_5, window_bounds = array<i64: 3, 64>}, {pipeline_mode = #tpu.pipeline_mode<synchronous>, transform_indices = @transform_6, window_bounds = array<i64: 3, 1>}, {transform_indices = @transform_7, window_bounds = array<i64: 3, 256>}]} {
    %c0 = arith.constant 0 : index
    %c0_0 = arith.constant 0 : index
    %0 = vector.load %arg1[%c0, %c0_0] : memref<256x64xbf16, #tpu.memory_space<vmem>>, vector<256x64xbf16>
    %c0_1 = arith.constant 0 : index
    %c0_2 = arith.constant 0 : index
    %1 = vector.load %arg2[%c0_1, %c0_2] : memref<64x64xbf16, #tpu.memory_space<vmem>>, vector<64x64xbf16>
    %cst = arith.constant dense<0.000000e+00> : vector<256x64xf32>
    %2 = tpu.matmul %0, %1, %cst {dimension_numbers = #tpu.dot_dimension_numbers<[1], [0], [0], [1], [0, 0, 1, 1], [], []>} : vector<256x64xbf16>, vector<64x64xbf16>, vector<256x64xf32> -> vector<256x64xf32>
    %c0_3 = arith.constant 0 : index
    %c0_4 = arith.constant 0 : index
    %3 = vector.load %arg3[%c0_3, %c0_4] : memref<1x64xf32, #tpu.memory_space<vmem>>, vector<1x64xf32>
    %4 = vector.broadcast %3 : vector<1x64xf32> to vector<256x64xf32>
    %5 = arith.addf %2, %4 : vector<256x64xf32>
    %6 = arith.truncf %5 : vector<256x64xf32> to vector<256x64xbf16>
    %cst_5 = arith.constant 0.000000e+00 : bf16
    %7 = vector.broadcast %cst_5 : bf16 to vector<256x64xbf16>
    %8 = arith.maximumf %6, %7 : vector<256x64xbf16>
    %c0_6 = arith.constant 0 : index
    %c0_7 = arith.constant 0 : index
    %9 = vector.load %arg4[%c0_6, %c0_7] : memref<64x64xbf16, #tpu.memory_space<vmem>>, vector<64x64xbf16>
    %cst_8 = arith.constant dense<0.000000e+00> : vector<256x64xf32>
    %10 = tpu.matmul %8, %9, %cst_8 {dimension_numbers = #tpu.dot_dimension_numbers<[1], [0], [0], [1], [0, 0, 1, 1], [], []>} : vector<256x64xbf16>, vector<64x64xbf16>, vector<256x64xf32> -> vector<256x64xf32>
    %c0_9 = arith.constant 0 : index
    %c0_10 = arith.constant 0 : index
    %11 = vector.load %arg5[%c0_9, %c0_10] : memref<1x64xf32, #tpu.memory_space<vmem>>, vector<1x64xf32>
    %12 = vector.broadcast %11 : vector<1x64xf32> to vector<256x64xf32>
    %13 = arith.addf %10, %12 : vector<256x64xf32>
    %14 = arith.truncf %13 : vector<256x64xf32> to vector<256x64xbf16>
    %cst_11 = arith.constant 0.000000e+00 : bf16
    %15 = vector.broadcast %cst_11 : bf16 to vector<256x64xbf16>
    %16 = arith.maximumf %14, %15 : vector<256x64xbf16>
    %c0_12 = arith.constant 0 : index
    %c0_13 = arith.constant 0 : index
    %17 = vector.load %arg6[%c0_12, %c0_13] : memref<3x64xbf16, #tpu.memory_space<vmem>>, vector<3x64xbf16>
    %cst_14 = arith.constant dense<0.000000e+00> : vector<3x256xf32>
    %18 = tpu.matmul %17, %16, %cst_14 {dimension_numbers = #tpu.dot_dimension_numbers<[1], [1], [0], [0], [0, 0, 1, 0], [], []>} : vector<3x64xbf16>, vector<256x64xbf16>, vector<3x256xf32> -> vector<3x256xf32>
    %c0_15 = arith.constant 0 : index
    %c0_16 = arith.constant 0 : index
    %19 = vector.load %arg7[%c0_15, %c0_16] : memref<3x1xf32, #tpu.memory_space<vmem>>, vector<3x1xf32>
    %20 = vector.broadcast %19 : vector<3x1xf32> to vector<3x256xf32>
    %21 = arith.addf %18, %20 : vector<3x256xf32>
    %22 = arith.negf %21 : vector<3x256xf32>
    %23 = math.exp %22 : vector<3x256xf32>
    %cst_17 = arith.constant 1.000000e+00 : f32
    %24 = vector.broadcast %cst_17 : f32 to vector<3x256xf32>
    %25 = arith.addf %24, %23 : vector<3x256xf32>
    %26 = arith.divf %24, %25 : vector<3x256xf32>
    %c0_18 = arith.constant 0 : index
    %c0_19 = arith.constant 0 : index
    %27 = vector.load %arg8[%c0_18, %c0_19] : memref<3x256xf32, #tpu.memory_space<vmem>>, vector<3x256xf32>
    tpu.vector_store %arg8[%c0_18, %c0_19], %26 {strides = array<i32>} : memref<3x256xf32, #tpu.memory_space<vmem>>, vector<3x256xf32>,
    return
  }
  func.func @transform_0(%arg0: i32) -> (i32, i32) {
    %c0_i32 = arith.constant 0 : i32
    %c0_i32_0 = arith.constant 0 : i32
    return %arg0, %c0_i32 : i32, i32
  }
  func.func @transform_1(%arg0: i32) -> (i32, i32) {
    %c0_i32 = arith.constant 0 : i32
    %c0_i32_0 = arith.constant 0 : i32
    %c0_i32_1 = arith.constant 0 : i32
    return %c0_i32, %c0_i32_0 : i32, i32
  }
  func.func @transform_2(%arg0: i32) -> (i32, i32) {
    %c0_i32 = arith.constant 0 : i32
    %c0_i32_0 = arith.constant 0 : i32
    %c0_i32_1 = arith.constant 0 : i32
    return %c0_i32, %c0_i32_0 : i32, i32
  }
  func.func @transform_3(%arg0: i32) -> (i32, i32) {
    %c0_i32 = arith.constant 0 : i32
    %c0_i32_0 = arith.constant 0 : i32
    %c0_i32_1 = arith.constant 0 : i32
    return %c0_i32, %c0_i32_0 : i32, i32
  }
  func.func @transform_4(%arg0: i32) -> (i32, i32) {
    %c0_i32 = arith.constant 0 : i32
    %c0_i32_0 = arith.constant 0 : i32
    %c0_i32_1 = arith.constant 0 : i32
    return %c0_i32, %c0_i32_0 : i32, i32
  }
  func.func @transform_5(%arg0: i32) -> (i32, i32) {
    %c0_i32 = arith.constant 0 : i32
    %c0_i32_0 = arith.constant 0 : i32
    %c0_i32_1 = arith.constant 0 : i32
    return %c0_i32, %c0_i32_0 : i32, i32
  }
  func.func @transform_6(%arg0: i32) -> (i32, i32) {
    %c0_i32 = arith.constant 0 : i32
    %c0_i32_0 = arith.constant 0 : i32
    %c0_i32_1 = arith.constant 0 : i32
    return %c0_i32, %c0_i32_0 : i32, i32
  }
  func.func @transform_7(%arg0: i32) -> (i32, i32) {
    %c0_i32 = arith.constant 0 : i32
    %c0_i32_0 = arith.constant 0 : i32
    return %c0_i32, %arg0 : i32, i32
  }
}

</mosaic_0001>

<bundles_post_ra>
// kernel: tpu_custom_call.1
= control target key start
LH: loop header
LB: loop body
LE: loop exit
PB: predicated region body
PF: predicated region fallthrough
CT: control target
= control target key end

     0   :  { %12 = vsyncpa [#allocation3], 0  ;;  %s1908_s0 = inlined_call_operand.vmem [shape: bf16[512,64], index: 0, kind: input, shape index: {}]   ;;  %s1909_s1 = inlined_call_operand.vmem [shape: bf16[64,64], index: 1, kind: input, shape index: {}]   ;;  %s1910_s2 = inlined_call_operand.vmem [shape: f32[1,64], index: 2, kind: input, shape index: {}]   ;;  %s1911_s3 = inlined_call_operand.vmem [shape: bf16[64,64], index: 3, kind: input, shape index: {}]   ;;  %s1912_s4 = inlined_call_operand.vmem [shape: f32[1,64], index: 4, kind: input, shape index: {}]   ;;  %s1913_s5 = inlined_call_operand.vmem [shape: bf16[3,64], index: 5, kind: input, shape index: {}]   ;;  %s1914_s6 = inlined_call_operand.vmem [shape: f32[3,1], index: 6, kind: input, shape index: {}]   ;;  %s1915_s7 = inlined_call_operand.hbm [shape: f32[3,512], index: 7, kind: output, shape index: {}]  }
   0x1   :  { %14 = vsyncpa [#allocation3 + $0x1], 0  ;;  %s1543_s24 = smov 0   ;;  %s1545_s25 = smov 0  }
   0x2   :  { %s1547_s26 = smov 0   ;;  %s1549_s27 = smov 0  }
   0x3 LB: > { %s1564_s28 = sadd.s32 4294967295, %s1499_s27   ;;  %s1144_s29 = sadd.s32 4294967294, %s1499_s27   ;;  %s1499_s27 = sphi %s1549_s27, %s1921_s27   ;;  %s1495_s26 = sphi %s1547_s26, %s1920_s26   ;;  %s1491_s25 = sphi %s1545_s25, %s1919_s25   ;;  %s1487_s24 = sphi %s1543_s24, %s1918_s24  }
   0x4   : > { %s1568_s30 = sadd.s32 1, %s1499_s27   ;;  %s179_s8 = sadd.s32 1, %s1495_s26 }
   0x5   : > { %s176_s9 = ssub.s32 %s1499_s27, %s1568_s30  ;;  %p189_p0 = scmp.ne.s32.totalorder %s1495_s26, %s1491_s25 }
   0x6   : > { %p177_p1 = scmp.eq.s32.totalorder %s176_s9, 0  ;;  %p190_p2 = scmp.eq.s32.totalorder %s1564_s28, 1 }
   0x7   : > { %p195_p3 = scmp.ne.s32.totalorder %s1491_s25, %s1487_s24  ;;  %p196_p4 = scmp.eq.s32.totalorder %s1144_s29, 1 }
   0x8   : > { %s1579_s10 = scalar_select %p177_p1, %s1495_s26, %s179_s8  }
   0x9   : > { %p1581_p5 = por %p190_p2, %p189_p0  ;;  %p1585_p6 = por %p196_p4, %p195_p3 }
   0xa   : > { %p1147_p7 = scmp.ge.s32.totalorder %s1499_s27, 1  ;;  %p241_p8 = scmp.lt.s32.totalorder %s1499_s27, 3 }
   0xc   : > { %p242_p9 = pnand %p1147_p7, %p241_p8 }
   0xd   : > { %v1405_v0 = vld [vmem:[%s1909_s1] sm:$0xff] (!%p242_p9)   ;;  %s1149_s15 = sshll.u32 (!%p242_p9), %s1564_s28, 5  ;;  %v1406_v1 = vld [vmem:[%s1909_s1 + $0x8] sm:$0xff] (!%p242_p9)   ;;  %v1407_v2 = vld [vmem:[%s1909_s1 + $0x10] sm:$0xff] (!%p242_p9)   ;;  %vm432_vm0 = vcmask (!%p242_p9), 523264   ;;  %v1501_v24 = vmov (!%p242_p9), 0  }
   0xe   : > { %245 = sbr.rel (%p242_p9) target bundleno = 826 (0x33a), region = 48  ;;  %p274_p10 = scmp.lt.s32.totalorder (!%p242_p9), %s1149_s15, 63  ;;  %1276 = vmatprep.subr.bf16.mxu0 (!%p242_p9), %v1405_v0  ;;  %v1425_v3 = vld [vmem:[%s1911_s3] sm:$0xff] (!%p242_p9)   ;;  %v1426_v4 = vld [vmem:[%s1911_s3 + $0x8] sm:$0xff] (!%p242_p9)   ;;  %v1408_v6 = vld [vmem:[%s1909_s1 + $0x18] sm:$0xff] (!%p242_p9)   ;;  %1404 = vset.pattern.permute.xlu0 (!%p242_p9), %v1501_v24 }
   0xf   : > { %1277 = vmatpush3.bf16.msra.mxu0 (!%p242_p9), %v1405_v0  ;;  %1316 = vmatprep.subr.bf16.mxu1 (!%p242_p9), %v1425_v3  ;;  %v1427_v22 = vld [vmem:[%s1911_s3 + $0x10] sm:$0xff] (!%p242_p9)   ;;  %v1428_v23 = vld [vmem:[%s1911_s3 + $0x18] sm:$0xff] (!%p242_p9)   ;;  %v1657_v26 = vld [vmem:[%s1910_s2] ss:$0 sm:$0xff] (!%p242_p9)  ;;  %s270_s14 = sand.u32 (!%p242_p9), 1, %s1491_s25   ;;  %s1217_s16 = sshll.u32 (!%p242_p9), %s1564_s28, 7 }
  0x10   : > { %1278 = vmatprep.subr.bf16.mxu0 (!%p242_p9), %v1406_v1  ;;  %1317 = vmatpush3.bf16.msra.mxu1 (!%p242_p9), %v1425_v3  ;;  %s1866_s21 = scalar_lea.hbm (!%p242_p9), %s1915_s7, %s1217_s16  ;;  %s1502_s28 = smov (!%p242_p9), [#allocation2]  }
  0x11   : > { %1318 = vmatprep.subr.bf16.mxu1 (!%p242_p9), %v1426_v4  ;;  %s1441_s29 = sshll.u32 (!%p242_p9), %s1502_s28, 4  ;;  %s1442_s29 = int_to_ptr.vmem [resolvable:$false] %s1441_s29 }
  0x12   : > { %s1443_s8 = scalar_lea.vmem (!%p242_p9), %s1442_s29, 256 }
  0x13   : > { %1279 = vmatpush3.bf16.msra.mxu0 (!%p242_p9), %v1406_v1 }
  0x14   : > { %1280 = vmatprep.subr.bf16.mxu0 (!%p242_p9), %v1407_v2  ;;  %1319 = vmatpush3.bf16.msra.mxu1 (!%p242_p9), %v1426_v4 }
  0x15   : > { %s1923_s15 = smov (!%p274_p10, %s1149_s15), 63  ;;  %1320 = vmatprep.subr.bf16.mxu1 %v1427_v22 }
  0x16   : > { %s1150_s22 = sshll.u32 %s1923_s15, 2  ;;  %s1148_s15 = sshll.u32 %s270_s14, 3 }
  0x17   : > { %s1610_s13 = scalar_lea.vmem %s1908_s0, %s1150_s22  ;;  %1281 = vmatpush3.bf16.msra.mxu0 %v1407_v2  ;;  %s272_s17 = scalar_lea.vmem [#allocation2], %s1148_s15 }
  0x18   : > { %v1409_v5 = vld [vmem:[%s1610_s13] sm:$0xff]   ;;  %1282 = vmatprep.subr.bf16.mxu0 %v1408_v6  ;;  %v1410_v7 = vld [vmem:[%s1610_s13 + $0x8] sm:$0xff]   ;;  %v1411_v8 = vld [vmem:[%s1610_s13 + $0x10] sm:$0xff]   ;;  %1321 = vmatpush3.bf16.msra.mxu1 %v1427_v22  ;;  %s1085_s18 = sshll.u32 %s272_s17, 4  ;;  %s1071_s22 = scalar_lea.sflag [#allocation3], %s270_s14  ;;  %s1868_s18 = int_to_ptr.vmem [resolvable:$true] %s1085_s18 }
  0x19   : > { %1284 = vmatprep.mubr.msk.bf16.mxu0 %vm432_vm0, %v1409_v5  ;;  %v1412_v9 = vld [vmem:[%s1610_s13 + $0x18] sm:$0xff]   ;;  %v1413_v10 = vld [vmem:[%s1610_s13 + $0x20] sm:$0xff]   ;;  %v1414_v11 = vld [vmem:[%s1610_s13 + $0x28] sm:$0xff]   ;;  %1322 = vmatprep.subr.bf16.mxu1 %v1428_v23  ;;  %s1437_s23 = scalar_lea.vmem %s1868_s18, 128  ;;  %p1444_p0 = scmp.lt.s32.totalorder %s1868_s18, %s1442_s29 }
  0x1a   : > { %v1415_v12 = vld [vmem:[%s1610_s13 + $0x30] sm:$0xff]   ;;  %v1416_v13 = vld [vmem:[%s1610_s13 + $0x38] sm:$0xff]   ;;  %v1417_v14 = vld [vmem:[%s1610_s13 + $0x40] sm:$0xff]   ;;  %p1438_p11 = scmp.ne.s32.totalorder %s1868_s18, %s1437_s23  ;;  %p1445_p1 = scmp.lt.s32.totalorder %s1443_s8, %s1437_s23 }
  0x1b   : > { %1283 = vmatpush3.bf16.msra.mxu0 %v1408_v6  ;;  %v1418_v15 = vld [vmem:[%s1610_s13 + $0x48] sm:$0xff]   ;;  %v1419_v16 = vld [vmem:[%s1610_s13 + $0x50] sm:$0xff]   ;;  %v1420_v17 = vld [vmem:[%s1610_s13 + $0x58] sm:$0xff]  }
  0x1c   : > { %v1421_v18 = vld [vmem:[%s1610_s13 + $0x60] sm:$0xff]   ;;  %v1422_v19 = vld [vmem:[%s1610_s13 + $0x68] sm:$0xff]   ;;  %v1423_v20 = vld [vmem:[%s1610_s13 + $0x70] sm:$0xff]   ;;  %1323 = vmatpush3.bf16.msra.mxu1 %v1428_v23  ;;  %p1439_p12 = pnand %p1438_p11, %p1581_p5  ;;  %p1446_p2 = por %p1445_p1, %p1444_p0 }
  0x1d   : > { %v1424_v21 = vld [vmem:[%s1610_s13 + $0x78] sm:$0xff]  }
  0x1e   : > { %1285 = vmatmul.mubr.msk.bf16.vlgmr.msra.gmra.mrb[0].mxu0 %vm432_vm0, %v1410_v7  ;;  %p1440_p13 = pneg %p1439_p12 }
  0x1f   : > { %1288 = vmatprep.mubr.msk.bf16.mxu0 %vm432_vm0, %v1411_v8 }
  0x20   : > { %p1447_p3 = pnand %p1446_p2, %p1440_p13 }
  0x26   : > { %1289 = vmatmul.mubr.msk.bf16.gmra.mrb[4].mxu0 %vm432_vm0, %v1412_v9 }
  0x27   : > { %1292 = vmatprep.mubr.msk.bf16.mxu0 %vm432_vm0, %v1413_v10 }
  0x2e   : > { %1293 = vmatmul.mubr.msk.bf16.gmra.mrb[8].mxu0 %vm432_vm0, %v1414_v11 }
  0x2f   : > { %1296 = vmatprep.mubr.msk.bf16.mxu0 %vm432_vm0, %v1415_v12 }
  0x36   : > { %1297 = vmatmul.mubr.msk.bf16.gmra.mrb[12].mxu0 %vm432_vm0, %v1416_v13 }
  0x37   : > { %1300 = vmatprep.mubr.msk.bf16.mxu0 %vm432_vm0, %v1417_v14 }
  0x3e   : > { %1301 = vmatmul.mubr.msk.bf16.gmra.mrb[16].mxu0 %vm432_vm0, %v1418_v15 }
  0x3f   : > { %1304 = vmatprep.mubr.msk.bf16.mxu0 %vm432_vm0, %v1419_v16 }
  0x46   : > { %1305 = vmatmul.mubr.msk.bf16.gmra.mrb[20].mxu0 %vm432_vm0, %v1420_v17 }
  0x47   : > { %1308 = vmatprep.mubr.msk.bf16.mxu0 %vm432_vm0, %v1421_v18 }
  0x4e   : > { %1309 = vmatmul.mubr.msk.bf16.gmra.mrb[24].mxu0 %vm432_vm0, %v1422_v19 }
  0x4f   : > { %1312 = vmatprep.mubr.msk.bf16.mxu0 %vm432_vm0, %v1423_v20 }
  0x56   : > { %1313 = vmatmul.mubr.msk.bf16.gmra.mrb[28].mxu0 %vm432_vm0, %v1424_v21 }
  0xf1   : > { %v1286_v25 = vpop.f32.mrb[0].mxu0 }
  0xf2   : > { %v515_v27 = vpop.f32.mrb[1].mxu0  ;;  %v524_v29 = vadd.f32 %v1286_v25, %v1657_v26 }
  0xf3   : > { %v1287_v28 = vpop.f32.mrb[2].mxu0  ;;  %v516_v32 = vadd.f32 %v1657_v26, %v515_v27 }
  0xf4   : > { %v527_v30 = vadd.f32 %v1287_v28, %v1657_v26  ;;  %v518_v31 = vpop.f32.mrb[3].mxu0 }
  0xf5   : > { %v519_v33 = vadd.f32 %v1657_v26, %v518_v31 }
  0xf6   : > { %v643_v34 = vpack.c.bf16 %v527_v30, %v524_v29 }
  0xf7   : > { %v642_v35 = vpack.c.bf16 %v519_v33, %v516_v32 }
  0xf8   : > { %v659_v38 = vmax.bf16 %v1501_v24, %v643_v34 }
  0xf9   : > { %v1290_v36 = vpop.f32.mrb[4].mxu0  ;;  %v658_v37 = vmax.bf16 %v1501_v24, %v642_v35 }
  0xfa   : > { %v531_v39 = vpop.f32.mrb[5].mxu0  ;;  %v540_v41 = vadd.f32 %v1290_v36, %v1657_v26 }
  0xfb   : > { %v1291_v40 = vpop.f32.mrb[6].mxu0  ;;  %1324 = vmatprep.mubr.msk.bf16.mxu1 %vm432_vm0, %v658_v37  ;;  %v532_v44 = vadd.f32 %v1657_v26, %v531_v39 }
  0xfc   : > { %v543_v42 = vadd.f32 %v1291_v40, %v1657_v26  ;;  %v534_v43 = vpop.f32.mrb[7].mxu0  ;;  %1325 = vmatmul.mubr.msk.bf16.vlgmr.msra.gmra.mrb[0].mxu1 %vm432_vm0, %v659_v38 }
  0xfd   : > { %v535_v45 = vadd.f32 %v1657_v26, %v534_v43 }
  0xfe   : > { %v645_v46 = vpack.c.bf16 %v543_v42, %v540_v41 }
  0xff   : > { %v644_v47 = vpack.c.bf16 %v535_v45, %v532_v44 }
 0x100   : > { %v661_v50 = vmax.bf16 %v1501_v24, %v645_v46 }
 0x101   : > { %v660_v48 = vmax.bf16 %v1501_v24, %v644_v47  ;;  %v1294_v49 = vpop.f32.mrb[8].mxu0 }
 0x102   : > { %v547_v51 = vpop.f32.mrb[9].mxu0  ;;  %v556_v53 = vadd.f32 %v1294_v49, %v1657_v26 }
 0x103   : > { %v1295_v52 = vpop.f32.mrb[10].mxu0  ;;  %1328 = vmatprep.mubr.msk.bf16.mxu1 %vm432_vm0, %v660_v48  ;;  %v548_v56 = vadd.f32 %v1657_v26, %v547_v51 }
 0x104   : > { %v559_v54 = vadd.f32 %v1295_v52, %v1657_v26  ;;  %v550_v55 = vpop.f32.mrb[11].mxu0  ;;  %1329 = vmatmul.mubr.msk.bf16.gmra.mrb[4].mxu1 %vm432_vm0, %v661_v50 }
 0x105   : > { %v551_v57 = vadd.f32 %v1657_v26, %v550_v55 }
 0x106   : > { %v647_v58 = vpack.c.bf16 %v559_v54, %v556_v53 }
 0x107   : > { %v646_v59 = vpack.c.bf16 %v551_v57, %v548_v56 }
 0x108   : > { %v663_v62 = vmax.bf16 %v1501_v24, %v647_v58 }
 0x109   : > { %v662_v60 = vmax.bf16 %v1501_v24, %v646_v59  ;;  %v1298_v61 = vpop.f32.mrb[12].mxu0 }
 0x10a   : > { %v563_v63 = vpop.f32.mrb[13].mxu0  ;;  %v572_v1 = vadd.f32 %v1298_v61, %v1657_v26 }
 0x10b   : > { %v1299_v0 = vpop.f32.mrb[14].mxu0  ;;  %1332 = vmatprep.mubr.msk.bf16.mxu1 %vm432_vm0, %v662_v60  ;;  %v564_v4 = vadd.f32 %v1657_v26, %v563_v63  ;;  %v1726_v60 = vld [vmem:[%s1913_s5] sm:$0x3] }
 0x10c   : > { %v575_v2 = vadd.f32 %v1299_v0, %v1657_v26  ;;  %v566_v3 = vpop.f32.mrb[15].mxu0  ;;  %1333 = vmatmul.mubr.msk.bf16.gmra.mrb[8].mxu1 %vm432_vm0, %v663_v62  ;;  %1274 = vmatprep.mubr.msk.bf16.mxu0 %vm432_vm0, %v1726_v60  ;;  %v1736_v62 = vld [vmem:[%s1912_s4] ss:$0 sm:$0xff] }
 0x10d   : > { %v567_v5 = vadd.f32 %v1657_v26, %v566_v3 }
 0x10e   : > { %v649_v6 = vpack.c.bf16 %v575_v2, %v572_v1 }
 0x10f   : > { %v648_v7 = vpack.c.bf16 %v567_v5, %v564_v4 }
 0x110   : > { %v665_v10 = vmax.bf16 %v1501_v24, %v649_v6 }
 0x111   : > { %v664_v8 = vmax.bf16 %v1501_v24, %v648_v7  ;;  %v1302_v9 = vpop.f32.mrb[16].mxu0 }
 0x112   : > { %v579_v11 = vpop.f32.mrb[17].mxu0  ;;  %v588_v13 = vadd.f32 %v1302_v9, %v1657_v26 }
 0x113   : > { %v1303_v12 = vpop.f32.mrb[18].mxu0  ;;  %1336 = vmatprep.mubr.msk.bf16.mxu1 %vm432_vm0, %v664_v8  ;;  %v580_v16 = vadd.f32 %v1657_v26, %v579_v11 }
 0x114   : > { %v591_v14 = vadd.f32 %v1303_v12, %v1657_v26  ;;  %v582_v15 = vpop.f32.mrb[19].mxu0  ;;  %1337 = vmatmul.mubr.msk.bf16.gmra.mrb[12].mxu1 %vm432_vm0, %v665_v10 }
 0x115   : > { %v583_v17 = vadd.f32 %v1657_v26, %v582_v15 }
 0x116   : > { %v651_v18 = vpack.c.bf16 %v591_v14, %v588_v13 }
 0x117   : > { %v650_v19 = vpack.c.bf16 %v583_v17, %v580_v16 }
 0x118   : > { %v667_v22 = vmax.bf16 %v1501_v24, %v651_v18 }
 0x119   : > { %v666_v20 = vmax.bf16 %v1501_v24, %v650_v19  ;;  %v1306_v21 = vpop.f32.mrb[20].mxu0 }
 0x11a   : > { %v604_v23 = vadd.f32 %v1306_v21, %v1657_v26  ;;  %v595_v25 = vpop.f32.mrb[21].mxu0 }
 0x11b   : > { %v596_v27 = vadd.f32 %v1657_v26, %v595_v25  ;;  %1340 = vmatprep.mubr.msk.bf16.mxu1 %vm432_vm0, %v666_v20  ;;  %v1307_v28 = vpop.f32.mrb[22].mxu0 }
 0x11c   : > { %v607_v29 = vadd.f32 %v1307_v28, %v1657_v26  ;;  %1341 = vmatmul.mubr.msk.bf16.gmra.mrb[16].mxu1 %vm432_vm0, %v667_v22  ;;  %v598_v30 = vpop.f32.mrb[23].mxu0 }
 0x11d   : > { %v599_v31 = vadd.f32 %v1657_v26, %v598_v30 }
 0x11e   : > { %v653_v32 = vpack.c.bf16 %v607_v29, %v604_v23 }
 0x11f   : > { %v652_v33 = vpack.c.bf16 %v599_v31, %v596_v27 }
 0x120   : > { %v669_v34 = vmax.bf16 %v1501_v24, %v653_v32 }
 0x121   : > { %v668_v35 = vmax.bf16 %v1501_v24, %v652_v33  ;;  %v1310_v36 = vpop.f32.mrb[24].mxu0 }
 0x122   : > { %v620_v37 = vadd.f32 %v1310_v36, %v1657_v26  ;;  %v611_v38 = vpop.f32.mrb[25].mxu0 }
 0x123   : > { %1344 = vmatprep.mubr.msk.bf16.mxu1 %vm432_vm0, %v668_v35  ;;  %v612_v39 = vadd.f32 %v1657_v26, %v611_v38  ;;  %v1311_v40 = vpop.f32.mrb[26].mxu0 }
 0x124   : > { %1345 = vmatmul.mubr.msk.bf16.gmra.mrb[20].mxu1 %vm432_vm0, %v669_v34  ;;  %v623_v41 = vadd.f32 %v1311_v40, %v1657_v26  ;;  %v614_v42 = vpop.f32.mrb[27].mxu0 }
 0x125   : > { %v615_v43 = vadd.f32 %v1657_v26, %v614_v42 }
 0x126   : > { %v655_v44 = vpack.c.bf16 %v623_v41, %v620_v37 }
 0x127   : > { %v654_v45 = vpack.c.bf16 %v615_v43, %v612_v39 }
 0x128   : > { %v671_v46 = vmax.bf16 %v1501_v24, %v655_v44 }
 0x129   : > { %v670_v47 = vmax.bf16 %v1501_v24, %v654_v45  ;;  %v1314_v48 = vpop.f32.mrb[28].mxu0 }
 0x12a   : > { %v636_v49 = vadd.f32 %v1314_v48, %v1657_v26  ;;  %v627_v50 = vpop.f32.mrb[29].mxu0 }
 0x12b   : > { %1348 = vmatprep.mubr.msk.bf16.mxu1 %vm432_vm0, %v670_v47  ;;  %v628_v51 = vadd.f32 %v1657_v26, %v627_v50  ;;  %v1315_v52 = vpop.f32.mrb[30].mxu0 }
 0x12c   : > { %1349 = vmatmul.mubr.msk.bf16.gmra.mrb[24].mxu1 %vm432_vm0, %v671_v46  ;;  %v639_v53 = vadd.f32 %v1315_v52, %v1657_v26  ;;  %v630_v54 = vpop.f32.mrb[31].mxu0 }
 0x12d   : > { %v631_v55 = vadd.f32 %v1657_v26, %v630_v54  ;;  %v955_v26 = vld [vmem:[%s1914_s6] sm:$0x7] }
 0x12e   : > { %v657_v56 = vpack.c.bf16 %v639_v53, %v636_v49  ;;  %958 = vperm.xlu0 %1404, %v955_v26  }
 0x12f   : > { %v656_v57 = vpack.c.bf16 %v631_v55, %v628_v51 }
 0x130   : > { %v673_v58 = vmax.bf16 %v1501_v24, %v657_v56 }
 0x131   : > { %v672_v59 = vmax.bf16 %v1501_v24, %v656_v57 }
 0x133   : > { %1352 = vmatprep.mubr.msk.bf16.mxu1 %vm432_vm0, %v672_v59 }
 0x134   : > { %1353 = vmatmul.mubr.msk.bf16.gmra.mrb[28].mxu1 %vm432_vm0, %v673_v58 }
 0x1cf   : > { %v1326_v61 = vpop.f32.mrb[0].mxu1 }
 0x1d0   : > { %v795_v63 = vpop.f32.mrb[1].mxu1  ;;  %v1739_v1 = vadd.f32 %v1326_v61, %v1736_v62 }
 0x1d1   : > { %v1327_v0 = vpop.f32.mrb[2].mxu1  ;;  %v796_v4 = vadd.f32 %v1736_v62, %v795_v63 }
 0x1d2   : > { %v1742_v2 = vadd.f32 %v1327_v0, %v1736_v62  ;;  %v798_v3 = vpop.f32.mrb[3].mxu1 }
 0x1d3   : > { %v799_v5 = vadd.f32 %v1736_v62, %v798_v3 }
 0x1d4   : > { %v923_v6 = vpack.c.bf16 %v1742_v2, %v1739_v1 }
 0x1d5   : > { %v922_v7 = vpack.c.bf16 %v799_v5, %v796_v4 }
 0x1d6   : > { %v939_v0 = vmax.bf16 %v1501_v24, %v923_v6 }
 0x1d7   : > { %v1330_v8 = vpop.f32.mrb[4].mxu1  ;;  %v938_v49 = vmax.bf16 %v1501_v24, %v922_v7 }
 0x1d8   : > { %v811_v9 = vpop.f32.mrb[5].mxu1  ;;  %v1749_v11 = vadd.f32 %v1330_v8, %v1736_v62  ;;  %v968_v7 = vsel %vm432_vm0, %v939_v0, 0 }
 0x1d9   : > { %v1331_v10 = vpop.f32.mrb[6].mxu1  ;;  %v1755_v14 = vadd.f32 %v1736_v62, %v811_v9  ;;  %v965_v58 = vsel %vm432_vm0, %v938_v49, 0 }
 0x1da   : > { %v1752_v12 = vadd.f32 %v1331_v10, %v1736_v62  ;;  %v814_v13 = vpop.f32.mrb[7].mxu1 }
 0x1db   : > { %v1758_v15 = vadd.f32 %v1736_v62, %v814_v13 }
 0x1dc   : > { %v925_v16 = vpack.c.bf16 %v1752_v12, %v1749_v11 }
 0x1dd   : > { %v924_v17 = vpack.c.bf16 %v1758_v15, %v1755_v14 }
 0x1df   : > { %v1334_v18 = vpop.f32.mrb[8].mxu1  ;;  %v940_v15 = vmax.bf16 %v1501_v24, %v924_v17 }
 0x1e0   : > { %v827_v19 = vpop.f32.mrb[9].mxu1  ;;  %v1765_v21 = vadd.f32 %v1334_v18, %v1736_v62 }
 0x1e1   : > { %v1335_v20 = vpop.f32.mrb[10].mxu1  ;;  %v1771_v25 = vadd.f32 %v1736_v62, %v827_v19 }
 0x1e2   : > { %v1768_v22 = vadd.f32 %v1335_v20, %v1736_v62  ;;  %v830_v23 = vpop.f32.mrb[11].mxu1 }
 0x1e3   : > { %v1774_v27 = vadd.f32 %v1736_v62, %v830_v23 }
 0x1e4   : > { %v927_v28 = vpack.c.bf16 %v1768_v22, %v1765_v21 }
 0x1e5   : > { %v926_v29 = vpack.c.bf16 %v1774_v27, %v1771_v25 }
 0x1e6   : > { %v943_v11 = vmax.bf16 %v1501_v24, %v927_v28  ;;  %v959_v28 = vpop.permute.xlu0 %958 }
 0x1e7   : > { %v1338_v30 = vpop.f32.mrb[12].mxu1 }
 0x1e8   : > { %v843_v31 = vpop.f32.mrb[13].mxu1  ;;  %v1781_v33 = vadd.f32 %v1338_v30, %v1736_v62 }
 0x1e9   : > { %v1339_v32 = vpop.f32.mrb[14].mxu1  ;;  %v1787_v36 = vadd.f32 %v1736_v62, %v843_v31  ;;  %v971_v31 = vsel %vm432_vm0, %v940_v15, 0 }
 0x1ea   : > { %v1784_v34 = vadd.f32 %v1339_v32, %v1736_v62  ;;  %v846_v35 = vpop.f32.mrb[15].mxu1 }
 0x1eb   : > { %v1790_v37 = vadd.f32 %v1736_v62, %v846_v35 }
 0x1ec   : > { %v929_v38 = vpack.c.bf16 %v1784_v34, %v1781_v33 }
 0x1ed   : > { %v928_v39 = vpack.c.bf16 %v1790_v37, %v1787_v36 }
 0x1ee   : > { %v945_v21 = vmax.bf16 %v1501_v24, %v929_v38 }
 0x1ef   : > { %v1342_v40 = vpop.f32.mrb[16].mxu1  ;;  %v944_v25 = vmax.bf16 %v1501_v24, %v928_v39 }
 0x1f0   : > { %v859_v41 = vpop.f32.mrb[17].mxu1  ;;  %v868_v43 = vadd.f32 %v1342_v40, %v1736_v62  ;;  %v986_v22 = vsel %vm432_vm0, %v945_v21, 0 }
 0x1f1   : > { %v1343_v42 = vpop.f32.mrb[18].mxu1  ;;  %v860_v46 = vadd.f32 %v1736_v62, %v859_v41 }
 0x1f2   : > { %v871_v44 = vadd.f32 %v1343_v42, %v1736_v62  ;;  %v862_v45 = vpop.f32.mrb[19].mxu1 }
 0x1f3   : > { %v863_v47 = vadd.f32 %v1736_v62, %v862_v45 }
 0x1f4   : > { %v931_v48 = vpack.c.bf16 %v871_v44, %v868_v43  ;;  %v941_v43 = vmax.bf16 %v1501_v24, %v925_v16  ;;  %v980_v16 = vsel %vm432_vm0, %v943_v11, 0 }
 0x1f5   : > { %v930_v50 = vpack.c.bf16 %v863_v47, %v860_v46  ;;  %v942_v47 = vmax.bf16 %v1501_v24, %v926_v29  ;;  %v983_v29 = vsel %vm432_vm0, %v944_v25, 0 }
 0x1f6   : > { %v947_v55 = vmax.bf16 %v1501_v24, %v931_v48  ;;  %v974_v46 = vsel %vm432_vm0, %v941_v43, 0 }
 0x1f7   : > { %v946_v51 = vmax.bf16 %v1501_v24, %v930_v50  ;;  %v1346_v52 = vpop.f32.mrb[20].mxu1  ;;  %v977_v48 = vsel %vm432_vm0, %v942_v47, 0 }
 0x1f8   : > { %v884_v53 = vadd.f32 %v1346_v52, %v1736_v62  ;;  %v875_v54 = vpop.f32.mrb[21].mxu1 }
 0x1f9   : > { %v876_v56 = vadd.f32 %v1736_v62, %v875_v54  ;;  %1356 = vmatprep.subr.msk.bf16.mxu0 %vm432_vm0, %v946_v51  ;;  %v1347_v57 = vpop.f32.mrb[22].mxu1 }
 0x1fa   : > { %v887_v59 = vadd.f32 %v1347_v57, %v1736_v62  ;;  %1259 = vmatpush3.bf16.xpose.msra.mxu0 %v965_v58  ;;  %v878_v26 = vpop.f32.mrb[23].mxu1 }
 0x1fb   : > { %v879_v61 = vadd.f32 %v1736_v62, %v878_v26  ;;  %1357 = vmatprep.subr.msk.bf16.mxu0 %vm432_vm0, %v947_v55 }
 0x1fc   : > { %v933_v63 = vpack.c.bf16 %v887_v59, %v884_v53 }
 0x1fd   : > { %v932_v1 = vpack.c.bf16 %v879_v61, %v876_v56 }
 0x1fe   : > { %v949_v30 = vmax.bf16 %v1501_v24, %v933_v63 }
 0x1ff   : > { %v948_v2 = vmax.bf16 %v1501_v24, %v932_v1  ;;  %v1350_v3 = vpop.f32.mrb[24].mxu1 }
 0x200   : > { %v900_v4 = vadd.f32 %v1350_v3, %v1736_v62  ;;  %v891_v5 = vpop.f32.mrb[25].mxu1 }
 0x201   : > { %v892_v8 = vadd.f32 %v1736_v62, %v891_v5  ;;  %v1351_v9 = vpop.f32.mrb[26].mxu1 }
 0x202   : > { %1261 = vmatpush3.bf16.xpose.msra.mxu0 %v968_v7  ;;  %v903_v10 = vadd.f32 %v1351_v9, %v1736_v62  ;;  %v894_v13 = vpop.f32.mrb[27].mxu1 }
 0x203   : > { %1358 = vmatprep.subr.msk.bf16.mxu0 %vm432_vm0, %v948_v2  ;;  %v895_v6 = vadd.f32 %v1736_v62, %v894_v13 }
 0x204   : > { %v935_v14 = vpack.c.bf16 %v903_v10, %v900_v4 }
 0x205   : > { %v934_v18 = vpack.c.bf16 %v895_v6, %v892_v8 }
 0x207   : > { %v1354_v19 = vpop.f32.mrb[28].mxu1  ;;  %v950_v45 = vmax.bf16 %v1501_v24, %v934_v18 }
 0x208   : > { %v916_v20 = vadd.f32 %v1354_v19, %v1736_v62  ;;  %v907_v23 = vpop.f32.mrb[29].mxu1 }
 0x209   : > { %v908_v32 = vadd.f32 %v1736_v62, %v907_v23  ;;  %v1355_v35 = vpop.f32.mrb[30].mxu1 }
 0x20a   : > { %1263 = vmatpush3.bf16.xpose.msra.mxu0 %v971_v31  ;;  %v919_v40 = vadd.f32 %v1355_v35, %v1736_v62  ;;  %v910_v41 = vpop.f32.mrb[31].mxu1 }
 0x20b   : > { %1359 = vmatprep.subr.msk.bf16.mxu0 %vm432_vm0, %v949_v30  ;;  %v911_v17 = vadd.f32 %v1736_v62, %v910_v41  ;;  %v951_v62 = vmax.bf16 %v1501_v24, %v935_v14 }
 0x20c   : > { %v937_v42 = vpack.c.bf16 %v919_v40, %v916_v20 }
 0x20d   : > { %v936_v44 = vpack.c.bf16 %v911_v17, %v908_v32 }
 0x20e   : > { %v953_v27 = vmax.bf16 %v1501_v24, %v937_v42 }
 0x20f   : > { %v952_v12 = vmax.bf16 %v1501_v24, %v936_v44 }
 0x212   : > { %1265 = vmatpush3.bf16.xpose.msra.mxu0 %v974_v46 }
 0x213   : > { %1360 = vmatprep.subr.msk.bf16.mxu0 %vm432_vm0, %v950_v45 }
 0x21a   : > { %1267 = vmatpush3.bf16.xpose.msra.mxu0 %v977_v48 }
 0x21b   : > { %1361 = vmatprep.subr.msk.bf16.mxu0 %vm432_vm0, %v951_v62 }
 0x222   : > { %1269 = vmatpush3.bf16.xpose.msra.mxu0 %v980_v16 }
 0x223   : > { %1362 = vmatprep.subr.msk.bf16.mxu0 %vm432_vm0, %v952_v12 }
 0x22a   : > { %1271 = vmatpush3.bf16.xpose.msra.mxu0 %v983_v29 }
 0x22b   : > { %1363 = vmatprep.subr.msk.bf16.mxu0 %vm432_vm0, %v953_v27 }
 0x232   : > { %1273 = vmatpush3.bf16.xpose.msra.mxu0 %v986_v22 }
 0x239   : > { %1275 = vmatmul.mubr.msk.bf16.vlgmr.msra.gmra.mrb[32].mxu0 %vm432_vm0, %v1726_v60 }
 0x30c   : > { %v1046_v36 = vpop.f32.mrb[32].mxu0 }
 0x30d   : > { %v1047_v37 = vadd.f32 %v1046_v36, %v959_v28  ;;  %v1048_v39 = vpop.f32.mrb[33].mxu0 }
 0x30e   : > { %v1049_v49 = vadd.f32 %v1048_v39, %v959_v28  ;;  %v1050_v50 = vpop.f32.mrb[34].mxu0 }
 0x30f   : > { %v1210_v51 = vmul.f32 -1.442695, %v1047_v37  ;;  %v1051_v52 = vpop.f32.mrb[35].mxu0 }
 0x310   : > { %v1211_v53 = vmul.f32 -1.442695, %v1049_v49 }
 0x311   : > { %1429 = vpow2.f32 %v1210_v51 }
 0x312   : > { %1431 = vpow2.f32 %v1211_v53 }
 0x31b   : > { %v1430_v24 = vpop.eup %1429 }
 0x31c   : > { %v1432_v33 = vpop.eup %1431  ;;  %v1059_v34 = vadd.f32 1.0, %v1430_v24 }
 0x31d   : > { %v1060_v38 = vadd.f32 1.0, %v1432_v33 }
 0x31e   : > { %1433 = vrcp.f32 %v1059_v34 }
 0x31f   : > { %1435 = vrcp.f32 %v1060_v38 }
 0x328   : > { %v1434_v60 = vpop.eup %1433 }
 0x329   : > { %v1436_v54 = vpop.eup %1435 }
 0x32a   : > { %v1067_v55 = vcombine.low %v1434_v60, %v1436_v54 }
 0x32c   : > { %1069 = vst [vmem:[%s272_s17] sm:$0x77] %v1067_v55 }
 0x32d   : > { %1450 = shalt.err (!%p1447_p3)
}
 0x32e   : > { %s1451_s9 = scalar_lea.hbm %s1866_s21, 128  ;;  %s1455_s15 = scalar_lea.hbm %s1915_s7, 256 }
 0x32f   : > { %p1452_p4 = scmp.ne.s32.totalorder %s1866_s21, %s1451_s9  ;;  %p1456_p9 = scmp.lt.u32.totalorder %s1866_s21, %s1915_s7 }
 0x330   : > { %p1457_p10 = scmp.lt.u32.totalorder %s1455_s15, %s1451_s9  ;;  %p1459_p12 = scmp.lt.u32.totalorder %s1451_s9, %s1866_s21 }
 0x331   : > { %p1453_p7 = pnand %p1452_p4, %p1581_p5 }
 0x332   : > { %p1458_p11 = por %p1457_p10, %p1456_p9 }
 0x333   : > { %p1454_p8 = pneg %p1453_p7 }
 0x334   : > { %p1460_p13 = por %p1459_p12, %p1458_p11 }
 0x336   : > { %p1461_p0 = pnand %p1460_p13, %p1454_p8 }
 0x338   : > { %1464 = shalt.err (!%p1461_p0)
}
 0x339   : > { %1364 = dma.vmem_to_hbm [thread:$0]  (%p1581_p5), %s1868_s18, 128, %s1866_s21, %s1071_s22  }
 0x33a PF: > { %p1370_p1 = scmp.ge.s32.totalorder %s1499_s27, 2  ;;  %s1097_s19 = sand.u32 1, %s1487_s24  }
 0x33b   : > { %s1098_s20 = scalar_lea.sflag [#allocation3], %s1097_s19 }
 0x33c   : > { %p1367_p2 = pnand %p1370_p1, %p1585_p6 }
 0x33e   : > { %1482 = dma.done.wait (!%p1367_p2), %s1098_s20, 128  }
 0x33f   : > { %1484 = vsyncadd (!%p1367_p2), %s1098_s20, 4294967168  ;;  %p17_p3 = scmp.ge.s32.totalorder %s1568_s30, 4   ;;  %s1918_s24 = smov %s1491_s25 }
 0x340   : > { %s1919_s25 = smov %s1495_s26  ;;  %s1920_s26 = smov %s1579_s10 }
 0x341   : > { %s1921_s27 = smov %s1568_s30  ;;  %19 = sbr.rel (!%p17_p3) target bundleno = 3 (0x3), region = 83 }
 0x348   :  { %1103 = vsyncpa [#allocation3], 1 }
 0x349   :  { %1105 = vsyncpa [#allocation3 + $0x1], 1 }

</bundles_post_ra>
